<compile_context>
chip_gen: v7x
topology: tpu7x:2x2x1
jax: 0.10.0
libtpu: 0.0.40
codegen_flags: <defaults>
</compile_context>

<pallas_src>
import functools

import jax
import jax.numpy as jnp
from jax.experimental import pallas as pl
from jax.experimental.pallas import tpu as pltpu


# --------------------------------------------------------------------------- #
# one-time probe: pin down the pltpu.roll shift convention.  np.roll puts
# x[127] at lane 0 after shift=+1; the probe raises if neither convention
# matches (instead of silently flipping the conv tap direction).
# --------------------------------------------------------------------------- #
@functools.lru_cache(maxsize=None)
def _pltpu_roll_matches_numpy():
  def k(x_ref, o_ref):
    o_ref[...] = pltpu.roll(x_ref[...], shift=1, axis=1)

  x = jnp.tile(jnp.arange(128, dtype=jnp.float32)[None, :], (8, 1))
  out = pl.pallas_call(
      k, out_shape=jax.ShapeDtypeStruct((8, 128), jnp.float32))(x)
  first = float(out[0, 0])
  if abs(first - 127.0) < 0.5:
    return True        # numpy convention: out[i] = x[i - shift]
  if abs(first - 1.0) < 0.5:
    return False       # opposite convention: out[i] = x[i + shift]
  raise RuntimeError(f"unexpected pltpu.roll convention (lane0={first})")


# --------------------------------------------------------------------------- #
# kernel: NB batch images per grid step, everything in (C, NB*H*W) layout
# --------------------------------------------------------------------------- #
def _cdb_kernel(x_ref, tapmask_ref, alpha_ref,
                w1_ref, b1_ref, w2_ref, b2_ref, w3_ref, b3_ref,
                out_ref, *, H, W, KH, KW, roll_like_numpy):
  lanes = x_ref.shape[-1]                               # NB * H * W (static)
  PH, PW = (KH - 1) // 2, (KW - 1) // 2
  taps = [(dh - PH, dw - PW) for dh in range(KH) for dw in range(KW)]

  # per-tap 0/1 boundary masks (also zero any roll that crosses an image
  # boundary inside the batch-concatenated lane slab); loaded once, reused by
  # all three convolutions.
  masks = [tapmask_ref[t] for t in range(KH * KW)]      # each (1, lanes)
  a1, a2, a3 = alpha_ref[0], alpha_ref[1], alpha_ref[2]

  def prelu(v, a):
    return jnp.where(v >= 0.0, v, a * v)

  def conv_bn(act, w_ref, b_ref):
    """SAME conv + folded BN as one bf16 im2col matmul (F, K*C) @ (K*C, lanes)."""
    cols = []
    for t, (ddh, ddw) in enumerate(taps):
      s = ddh * W + ddw                                 # flat spatial shift
      if s == 0:
        cols.append(act)                                # center tap: always valid
      else:
        amt = (-s) % lanes if roll_like_numpy else s % lanes
        shifted = pltpu.roll(act, shift=amt, axis=1)    # XLU lane rotation
        cols.append(shifted * masks[t])                 # zero out-of-image taps
    col = jnp.concatenate(cols, axis=0).astype(jnp.bfloat16)   # (K*C, lanes)
    return jnp.dot(w_ref[...], col,                     # bf16 x bf16 -> f32 acc
                   preferred_element_type=jnp.float32) + b_ref[...]

  # ---- CompetitiveDenseBlock (is_input=False): (PReLU -> Conv -> BN) x3 -----
  x = x_ref[...]
  out0 = conv_bn(prelu(x, a1), w1_ref, b1_ref)
  out1 = jnp.maximum(out0, conv_bn(prelu(out0, a2), w2_ref, b2_ref))
  out_ref[...] = conv_bn(prelu(out1, a3), w3_ref, b3_ref)


# --------------------------------------------------------------------------- #
# parameter init (PyTorch-equivalent shapes) and trace-time packing
# --------------------------------------------------------------------------- #
def init_weights(key, hp):
  CIN, F = hp['in_channels'], hp['filters']
  KH, KW = hp['kernel_h'], hp['kernel_w']
  eps = 1e-5
  ks = jax.random.split(key, 18)

  def bn_fold(kg, kb, km, kv, c):
    gamma = 1.0 + 0.1 * jax.random.normal(kg, (c,), jnp.float32)
    beta = 0.1 * jax.random.normal(kb, (c,), jnp.float32)
    mean = 0.1 * jax.random.normal(km, (c,), jnp.float32)
    var = jax.random.uniform(kv, (c,), jnp.float32, 0.5, 1.5)
    scale = gamma / jnp.sqrt(var + eps)
    shift = beta - mean * scale
    return scale.reshape(1, c), shift.reshape(1, c)

  w = {}
  w['a1'] = jnp.full((1, 1), 0.25, jnp.float32)   # nn.PReLU() default init
  w['a2'] = jnp.full((1, 1), 0.25, jnp.float32)
  w['a3'] = jnp.full((1, 1), 0.25, jnp.float32)
  w['w1'] = 0.1 * jax.random.normal(ks[0], (KH, KW, CIN, F), jnp.float32)
  w['b1'] = 0.05 * jax.random.normal(ks[1], (1, F), jnp.float32)
  w['w2'] = 0.1 * jax.random.normal(ks[2], (KH, KW, F, F), jnp.float32)
  w['b2'] = 0.05 * jax.random.normal(ks[3], (1, F), jnp.float32)
  w['w3'] = 0.1 * jax.random.normal(ks[4], (KH, KW, F, F), jnp.float32)
  w['b3'] = 0.05 * jax.random.normal(ks[5], (1, F), jnp.float32)
  w['s1'], w['t1'] = bn_fold(ks[6], ks[7], ks[8], ks[9], F)
  w['s2'], w['t2'] = bn_fold(ks[10], ks[11], ks[12], ks[13], F)
  w['s3'], w['t3'] = bn_fold(ks[14], ks[15], ks[16], ks[17], F)
  return w


def _pack_conv(w, b, bn_scale, bn_shift, c_in_pad, f_out_pad):
  """Fold inference BN into the conv and pack as bf16 (F_pad, KH*KW*C_pad).

  y = (conv(x, w) + b) * s + t  ==  conv(x, w*s) + (b*s + t)
  Packed-weight column index = (dh*KW + dw) * C_pad + c, matching the in-kernel
  im2col concatenation order.  Weights go to bf16 (MXU operand); the bias/shift
  stays f32 and is added after the f32 accumulation.
  """
  KH, KW, c_in, f_out = w.shape
  scale = bn_scale.reshape(f_out)
  w_eff = w * scale.reshape(1, 1, 1, f_out)
  b_eff = b.reshape(f_out) * scale + bn_shift.reshape(f_out)
  w_pad = jnp.zeros((KH, KW, c_in_pad, f_out_pad), jnp.float32)
  w_pad = w_pad.at[:, :, :c_in, :f_out].set(w_eff)
  w2d = jnp.transpose(w_pad, (3, 0, 1, 2)).reshape(f_out_pad, KH * KW * c_in_pad)
  b_col = jnp.zeros((f_out_pad, 1), jnp.float32).at[:f_out, 0].set(b_eff)
  return w2d.astype(jnp.bfloat16), b_col


# --------------------------------------------------------------------------- #
# wrapper
# --------------------------------------------------------------------------- #
def cdb_forward(x, weights, hp, *, batch_block=None, single_buffer_constants=True):
  """x: (N, in_channels, H, W) f32 NCHW.  Returns (N, filters, H, W) f32."""
  N, CIN, H, W = x.shape
  assert CIN == hp['in_channels']
  assert hp['stride'] == 1, "maxout requires shape-preserving (stride-1) convs"
  F, KH, KW = hp['filters'], hp['kernel_h'], hp['kernel_w']
  PH, PW = (KH - 1) // 2, (KW - 1) // 2
  K = KH * KW
  HW = H * W

  rup = lambda v, m: (v + m - 1) // m * m
  CP, FP = rup(CIN, 8), rup(F, 8)          # sublane-aligned channel padding

  # ---- batch blocking: NB images per grid step, concatenated on the lane axis
  if batch_block is None:
    batch_block = max(1, min(N, max(1, 2048 // HW)))
  NB = max(1, min(N, batch_block))
  Np = rup(N, NB)
  G = Np // NB
  if G > 1 and (NB * HW) % 128 != 0:       # keep lane blocks 128-aligned,
    NB, Np, G = N, N, 1                    # else fall back to one fat block
  LANES = NB * HW

  # lane-dense slab (pure reshapes/transpose in the wrapper, no in-kernel work)
  xf = x.reshape(N, CIN, HW).astype(jnp.float32)
  if CP > CIN:
    xf = jnp.pad(xf, ((0, 0), (0, CP - CIN), (0, 0)))
  if Np > N:
    xf = jnp.pad(xf, ((0, Np - N), (0, 0), (0, 0)))
  x_slab = jnp.transpose(xf, (1, 0, 2)).reshape(CP, Np * HW)   # lane = b*HW + p

  # per-tap validity masks (trace-time constants), tiled across the NB images
  p = jnp.arange(HW, dtype=jnp.int32)
  ph, pw = p // W, p % W
  taps = [(dh - PH, dw - PW) for dh in range(KH) for dw in range(KW)]
  tm = jnp.stack(
      [((ph + dh >= 0) & (ph + dh < H) & (pw + dw >= 0) & (pw + dw < W))
       for dh, dw in taps]).astype(jnp.float32)                 # (K, HW)
  tapmask = jnp.tile(tm, (1, NB)).reshape(K, 1, LANES)

  w_ = weights
  alphas = jnp.stack([w_['a1'][0, 0], w_['a2'][0, 0], w_['a3'][0, 0]]
                     ).astype(jnp.float32)                      # (3,) in SMEM
  w1, b1 = _pack_conv(w_['w1'], w_['b1'], w_['s1'], w_['t1'], CP, FP)
  w2, b2 = _pack_conv(w_['w2'], w_['b2'], w_['s2'], w_['t2'], FP, FP)
  w3, b3 = _pack_conv(w_['w3'], w_['b3'], w_['s3'], w_['t3'], FP, FP)

  kernel = functools.partial(_cdb_kernel, H=H, W=W, KH=KH, KW=KW,
                             roll_like_numpy=_pltpu_roll_matches_numpy())

  def call(const_mode):
    def cspec(shape):
      zeros = tuple(0 for _ in shape)
      imap = lambda g: zeros
      if const_mode is None:
        return pl.BlockSpec(shape, imap)
      return pl.BlockSpec(shape, imap, pipeline_mode=const_mode)

    grid_spec = pltpu.PrefetchScalarGridSpec(
        num_scalar_prefetch=0,
        grid=(G,),
        in_specs=[
            pl.BlockSpec((CP, LANES), lambda g: (0, g)),        # x slab
            cspec((K, 1, LANES)),                               # tap masks
            pl.BlockSpec(memory_space=pltpu.MemorySpace.SMEM),  # PReLU alphas
            cspec((FP, K * CP)), cspec((FP, 1)),                # w1 (bf16), b1
            cspec((FP, K * FP)), cspec((FP, 1)),                # w2 (bf16), b2
            cspec((FP, K * FP)), cspec((FP, 1)),                # w3 (bf16), b3
        ],
        out_specs=pl.BlockSpec((FP, LANES), lambda g: (0, g)),
    )
    return pl.pallas_call(
        kernel,
        out_shape=jax.ShapeDtypeStruct((FP, Np * HW), jnp.float32),
        grid_spec=grid_spec,
        compiler_params=pltpu.CompilerParams(
            dimension_semantics=("parallel",)),
    )(x_slab, tapmask, alphas, w1, b1, w2, b2, w3, b3)

  out_slab = None
  if single_buffer_constants:
    try:
      # constants never change block index across the grid: single-buffer them
      out_slab = call(pl.Buffered(1))
    except Exception:
      out_slab = None            # fall back to default double-buffering
  if out_slab is None:
    out_slab = call(None)

  out = out_slab.reshape(FP, Np, HW)
  out = jnp.transpose(out, (1, 0, 2))[:N, :F]
  return out.reshape(N, F, H, W)


# --------------------------------------------------------------------------- #
# pure-JAX reference mirroring the PyTorch module (NCHW, eval-mode BN).
# mxu_dtype=bfloat16 mirrors the kernel's bf16 MXU operands exactly.
# --------------------------------------------------------------------------- #
def reference_forward(x, w, hp, mxu_dtype=jnp.float32):
  KH, KW = hp['kernel_h'], hp['kernel_w']
  PH, PW = (KH - 1) // 2, (KW - 1) // 2

  def prelu(v, a):
    return jnp.where(v >= 0, v, a[0, 0] * v)

  def conv_bn(v, wk, b, s, t):
    scale = s.reshape(-1)
    w_eff = (wk * scale.reshape(1, 1, 1, -1)).astype(mxu_dtype).astype(jnp.float32)
    b_eff = b.reshape(-1) * scale + t.reshape(-1)
    v_c = v.astype(mxu_dtype).astype(jnp.float32)
    y = jax.lax.conv_general_dilated(
        v_c, w_eff, window_strides=(1, 1),
        padding=((PH, PH), (PW, PW)),
        dimension_numbers=('NCHW', 'HWIO', 'NCHW'),
        precision=jax.lax.Precision.HIGHEST)
    return y + b_eff.reshape(1, -1, 1, 1)

  out0 = conv_bn(prelu(x, w['a1']), w['w1'], w['b1'], w['s1'], w['t1'])
  out1 = jnp.maximum(out0, conv_bn(prelu(out0, w['a2']),
                                   w['w2'], w['b2'], w['s2'], w['t2']))
  return conv_bn(prelu(out1, w['a3']), w['w3'], w['b3'], w['s3'], w['t3'])


if __name__ == "__main__":
  hp = dict(in_channels=4, filters=8, kernel_h=3, kernel_w=3, stride=1)
  N = 2
  H = W = 16

  k = jax.random.PRNGKey(0)
  k_w, k_x = jax.random.split(k, 2)
  weights = init_weights(k_w, hp)
  x = jax.random.normal(k_x, (N, hp['in_channels'], H, W), jnp.float32)

  out = jax.block_until_ready(cdb_forward(x, weights, hp))
  assert out.shape == (N, hp['filters'], H, W), out.shape

  # exact check vs. a reference that uses the same bf16-rounded MXU operands
  ref_bf16 = jax.block_until_ready(
      reference_forward(x, weights, hp, mxu_dtype=jnp.bfloat16))
  err = float(jnp.max(jnp.abs(out - ref_bf16)))
  assert err < 1e-3, err

  # sanity check vs. the pure-f32 reference (difference = bf16 operand rounding)
  ref_f32 = jax.block_until_ready(reference_forward(x, weights, hp))
  err_f32 = float(jnp.max(jnp.abs(out - ref_f32)))
  assert err_f32 < 1e-1, err_f32

  print("KERNEL_OK")
</pallas_src>

<mosaic_0001>
module attributes {stable_mosaic.version = 11 : i64} {
  func.func @k(%arg0: memref<8x128xf32, #tpu.memory_space<vmem>>, %arg1: memref<8x128xf32, #tpu.memory_space<vmem>>) attributes {dimension_semantics = [], scalar_prefetch = 0 : i64, scratch_operands = 0 : i64, tpu.core_type = #tpu.core_type<tc>} {
    %c0 = arith.constant 0 : index
    %c0_0 = arith.constant 0 : index
    %0 = vector.load %arg0[%c0, %c0_0] : memref<8x128xf32, #tpu.memory_space<vmem>>, vector<8x128xf32>
    %c1_i32 = arith.constant 1 : i32
    %1 = tpu.dynamic_rotate %0 by %c1_i32 dim 1 : vector<8x128xf32>, i32 -> vector<8x128xf32>
    %c0_1 = arith.constant 0 : index
    %c0_2 = arith.constant 0 : index
    %2 = vector.load %arg1[%c0_1, %c0_2] : memref<8x128xf32, #tpu.memory_space<vmem>>, vector<8x128xf32>
    tpu.vector_store %arg1[%c0_1, %c0_2], %1 {strides = array<i32>} : memref<8x128xf32, #tpu.memory_space<vmem>>, vector<8x128xf32>,
    return
  }
}

</mosaic_0001>

<bundles_post_ra>
// kernel: tpu_custom_call.1
= control target key start
LH: loop header
LB: loop body
LE: loop exit
PB: predicated region body
PF: predicated region fallthrough
CT: control target
= control target key end

     0   :  { %6 = vsyncpa [#allocation3], 0  ;;  %s128_s0 = inlined_call_operand.hbm [shape: f32[8,128], index: 0, kind: input, shape index: {}]   ;;  %s129_s1 = inlined_call_operand.hbm [shape: f32[8,128], index: 1, kind: output, shape index: {}]  }
   0x1   :  { %7 = vsyncpa [#allocation4], 0  ;;  %s91_s6 = smov [#allocation2]   ;;  %s43_s10 = scalar_lea.hbm %s128_s0, 128 }
   0x2   :  { %s14_s7 = sshll.u32 %s91_s6, 4  ;;  %p44_p0 = scmp.ne.s32.totalorder %s128_s0, %s43_s10  ;;  %s15_s7 = int_to_ptr.vmem [resolvable:$true] %s14_s7 }
   0x3   :  { %p47_p1 = scmp.lt.u32.totalorder %s43_s10, %s128_s0 }
   0x5   :  { %p49_p2 = pnand %p47_p1, %p44_p0 }
   0x7   :  { %52 = shalt.err (!%p49_p2)
}
   0x8   :  { %s53_s15 = scalar_lea.vmem %s15_s7, 128  ;;  %p58_p4 = scmp.lt.s32.totalorder %s15_s7, %s15_s7 }
   0x9   :  { %p54_p3 = scmp.ne.s32.totalorder %s15_s7, %s53_s15  ;;  %p59_p5 = scmp.lt.s32.totalorder %s53_s15, %s53_s15 }
   0xb   :  { %p60_p6 = por %p59_p5, %p58_p4 }
   0xd   :  { %p61_p7 = pnand %p60_p6, %p54_p3 }
   0xf   :  { %64 = shalt.err (!%p61_p7)
}
  0x10   :  { %17 = dma.hbm_to_vmem [thread:$0]  %s128_s0, 128, %s15_s7, [#allocation3]  }
  0x11   :  { %87 = dma.done.wait [#allocation3], 128  }
  0x12   :  { %88 = vsyncadd [#allocation3], 4294967168  ;;  %v21_v0 = vld [vmem:[#allocation2] sm:$0xff]  ;;  %s92_s18 = smov 1   ;;  %s93_s19 = smov [#allocation5]  }
  0x13   :  { %22 = vrot.lane.b32.xlu0 %v21_v0, %s92_s18  ;;  %s31_s20 = sshll.u32 %s93_s19, 4  ;;  %s32_s20 = int_to_ptr.vmem [resolvable:$true] %s31_s20 }
  0x14   :  { %s65_s21 = scalar_lea.vmem %s32_s20, 128  ;;  %p70_p9 = scmp.lt.s32.totalorder %s32_s20, %s32_s20 }
  0x15   :  { %p66_p8 = scmp.ne.s32.totalorder %s32_s20, %s65_s21  ;;  %p71_p10 = scmp.lt.s32.totalorder %s65_s21, %s65_s21 }
  0x17   :  { %p72_p11 = por %p71_p10, %p70_p9 }
  0x19   :  { %p73_p12 = pnand %p72_p11, %p66_p8 }
  0x85   :  { %v23_v1 = vpop.permute.xlu0 %22 }
  0x86   :  { %24 = vst [vmem:[#allocation5] sm:$0xff] %v23_v1 }
  0x87   :  { %76 = shalt.err (!%p73_p12)
}
  0x88   :  { %s77_s0 = scalar_lea.hbm %s129_s1, 128 }
  0x89   :  { %p78_p13 = scmp.ne.s32.totalorder %s129_s1, %s77_s0  ;;  %p81_p0 = scmp.lt.u32.totalorder %s77_s0, %s129_s1 }
  0x8b   :  { %p83_p1 = pnand %p81_p0, %p78_p13 }
  0x8d   :  { %86 = shalt.err (!%p83_p1)
}
  0x8e   :  { %34 = dma.vmem_to_hbm [thread:$0]  %s32_s20, 128, %s129_s1, [#allocation4]  }
  0x8f   :  { %89 = dma.done.wait [#allocation4], 128  }
  0x90   :  { %90 = vsyncadd [#allocation4], 4294967168 }
  0x91   :  { %38 = vsyncpa [#allocation3], 1 }
  0x92   :  { %39 = vsyncpa [#allocation4], 1 }

</bundles_post_ra>
